<compile_context>
chip_gen: v6e
topology: v6e:2x2x1
jax: 0.10.0
libtpu: 0.0.40
codegen_flags: <defaults>
</compile_context>

<pallas_src>
import functools

import jax
import jax.numpy as jnp
from jax.experimental import pallas as pl
from jax.experimental.pallas import tpu as pltpu


def _round_up(n, m):
    return ((n + m - 1) // m) * m


# ----------------------------------------------------------------------------
# Kernel: one batch tile of the fused 4-layer MLP.
#   x_ref : (TB, S)   bf16 (or f32)
#   w1    : (S, H)    bf16 (or f32)     b1..b3 : (1, H) f32
#   w2,w3 : (H, H)    bf16 (or f32)
#   w4    : (1, H)    f32  (row vector of the H->1 output layer)
#   b4    : (1, 1)    f32 scalar in SMEM
#   o_ref : (TB, 1)   f32
# ----------------------------------------------------------------------------
def critic_kernel(x_ref, w1_ref, b1_ref, w2_ref, b2_ref,
                  w3_ref, b3_ref, w4_ref, b4_ref, o_ref):
    # Layer 1: MXU matmul, f32 accumulate; bias + ReLU on the f32 accumulator.
    h = jnp.dot(x_ref[...], w1_ref[...], preferred_element_type=jnp.float32)
    h = jnp.maximum(h + b1_ref[...], 0.0)

    # Layer 2
    h = jnp.dot(h.astype(w2_ref.dtype), w2_ref[...],
                preferred_element_type=jnp.float32)
    h = jnp.maximum(h + b2_ref[...], 0.0)

    # Layer 3
    h = jnp.dot(h.astype(w3_ref.dtype), w3_ref[...],
                preferred_element_type=jnp.float32)
    h = jnp.maximum(h + b3_ref[...], 0.0)

    # Output layer (H -> 1): VPU multiply + lane reduction instead of an
    # N=1 MXU matmul (uses the otherwise-idle XLU slot, no MXU drain).
    v = jnp.sum(h * w4_ref[...], axis=-1, keepdims=True) + b4_ref[0, 0]
    o_ref[...] = v.astype(o_ref.dtype)


# ----------------------------------------------------------------------------
# Wrapper: batch-tiled pallas_call with resident weights.
# ----------------------------------------------------------------------------
def critic_forward(x, params, *, block_b=512, use_bf16=True):
    (w1, b1), (w2, b2), (w3, b3), (w4, b4) = params
    B, S = x.shape
    H = w1.shape[1]

    mxu_dtype = jnp.bfloat16 if use_bf16 else jnp.float32
    # bf16 sublane packing prefers multiples of 16; f32 needs multiples of 8.
    row_align = 16 if use_bf16 else 8

    x_in = x.astype(mxu_dtype)
    w1m = w1.astype(mxu_dtype)
    w2m = w2.astype(mxu_dtype)
    w3m = w3.astype(mxu_dtype)
    w4_row = w4.reshape(1, H).astype(jnp.float32)   # (H,1) -> (1,H) row, f32 (VPU)
    b4_s = b4.reshape(1, 1).astype(jnp.float32)     # SMEM scalar

    # Batch tile: as large as requested, but never larger than the (aligned)
    # batch itself. Pad the batch to a tile multiple; garbage rows (zeros in)
    # are sliced off below.
    TB = min(block_b, _round_up(B, row_align))
    Bp = _round_up(B, TB)
    if Bp != B:
        x_in = jnp.pad(x_in, ((0, Bp - B), (0, 0)))
    grid = (Bp // TB,)

    in_specs = [
        pl.BlockSpec((TB, S), lambda i: (i, 0)),   # x: streamed over batch
        pl.BlockSpec((S, H), lambda i: (0, 0)),    # w1: resident
        pl.BlockSpec((1, H), lambda i: (0, 0)),    # b1
        pl.BlockSpec((H, H), lambda i: (0, 0)),    # w2
        pl.BlockSpec((1, H), lambda i: (0, 0)),    # b2
        pl.BlockSpec((H, H), lambda i: (0, 0)),    # w3
        pl.BlockSpec((1, H), lambda i: (0, 0)),    # b3
        pl.BlockSpec((1, H), lambda i: (0, 0)),    # w4 row (final layer)
        pl.BlockSpec((1, 1), lambda i: (0, 0),
                     memory_space=pltpu.SMEM),     # b4 scalar
    ]
    out_specs = pl.BlockSpec((TB, 1), lambda i: (i, 0))

    out = pl.pallas_call(
        critic_kernel,
        out_shape=jax.ShapeDtypeStruct((Bp, 1), jnp.float32),
        grid=grid,
        in_specs=in_specs,
        out_specs=out_specs,
        compiler_params=pltpu.CompilerParams(
            dimension_semantics=("parallel",),       # megacore on v7x
            vmem_limit_bytes=32 * 1024 * 1024,       # safe on v7x's 64 MiB VMEM
        ),
    )(x_in, w1m, b1, w2m, b2, w3m, b3, w4_row, b4_s)

    return out[:B]


# ----------------------------------------------------------------------------
# Deterministic parameter init matching nn.init.orthogonal_(w, gain=2),
# nn.init.zeros_(bias). Weights are returned already transposed to (in, out).
# ----------------------------------------------------------------------------
def orthogonal(key, out_dim, in_dim, gain):
    a = jax.random.normal(key, (out_dim, in_dim), dtype=jnp.float32)
    transpose = out_dim < in_dim
    if transpose:
        a = a.T
    q, r = jnp.linalg.qr(a)
    d = jnp.sign(jnp.diagonal(r))
    q = q * d[None, :]
    if transpose:
        q = q.T
    return gain * q  # shape (out_dim, in_dim), PyTorch convention


def make_critic_params(key, state_dim, hidden_size=64, gain=2.0):
    k1, k2, k3, k4 = jax.random.split(key, 4)
    dims = [(hidden_size, state_dim), (hidden_size, hidden_size),
            (hidden_size, hidden_size), (1, hidden_size)]
    keys = [k1, k2, k3, k4]
    params = []
    for k, (out_d, in_d) in zip(keys, dims):
        w_pt = orthogonal(k, out_d, in_d, gain)          # (out, in) PyTorch layout
        w = jnp.asarray(w_pt.T, dtype=jnp.float32)       # (in, out) for x @ W
        b = jnp.zeros((1, out_d), dtype=jnp.float32)     # 2D bias for TPU broadcast
        params.append((w, b))
    return params


# Pure-JAX reference mirroring the kernel's dtype behaviour (bf16 matmul
# operands, f32 accumulation) so the comparison isolates kernel correctness.
def critic_ref(x, params, *, use_bf16=True):
    (w1, b1), (w2, b2), (w3, b3), (w4, b4) = params
    md = jnp.bfloat16 if use_bf16 else jnp.float32

    def mm(a, w):
        return a.astype(md).astype(jnp.float32) @ w.astype(md).astype(jnp.float32)

    h = jnp.maximum(mm(x, w1) + b1, 0.0)
    h = jnp.maximum(mm(h, w2) + b2, 0.0)
    h = jnp.maximum(mm(h, w3) + b3, 0.0)
    return h @ w4 + b4.reshape(1, 1)   # final layer stays f32 (matches kernel)


if __name__ == "__main__":
    key = jax.random.PRNGKey(0)
    k_param, k_x = jax.random.split(key)

    batch = 20          # deliberately not a tile multiple -> exercises padding
    state_dim = 16
    hidden = 32

    params = make_critic_params(k_param, state_dim, hidden_size=hidden, gain=2.0)
    x = jax.random.normal(k_x, (batch, state_dim), dtype=jnp.float32)

    # block_b=16 -> multi-step batch grid even at this small demo size.
    value = critic_forward(x, params, block_b=16)
    value = jax.block_until_ready(value)

    ref = critic_ref(x, params)
    assert value.shape == (batch, 1), value.shape
    max_err = jnp.max(jnp.abs(value - ref))
    assert jnp.allclose(value, ref, atol=5e-3, rtol=5e-3), (
        f"mismatch: max abs err {max_err}")

    print("KERNEL_OK")
</pallas_src>

<mosaic_0001>
module attributes {stable_mosaic.version = 11 : i64} {
  func.func @critic_kernel(%arg0: i32, %arg1: memref<16x16xbf16, #tpu.memory_space<vmem>>, %arg2: memref<16x32xbf16, #tpu.memory_space<vmem>>, %arg3: memref<1x32xf32, #tpu.memory_space<vmem>>, %arg4: memref<32x32xbf16, #tpu.memory_space<vmem>>, %arg5: memref<1x32xf32, #tpu.memory_space<vmem>>, %arg6: memref<32x32xbf16, #tpu.memory_space<vmem>>, %arg7: memref<1x32xf32, #tpu.memory_space<vmem>>, %arg8: memref<1x32xf32, #tpu.memory_space<vmem>>, %arg9: memref<1x1xf32, #tpu.memory_space<smem>>, %arg10: memref<16x1xf32, #tpu.memory_space<vmem>>) attributes {dimension_semantics = [#tpu.dimension_semantics<parallel>], iteration_bounds = array<i64: 2>, scalar_prefetch = 0 : i64, scratch_operands = 0 : i64, tpu.core_type = #tpu.core_type<tc>, window_params = [{transform_indices = @transform_0, window_bounds = array<i64: 16, 16>}, {pipeline_mode = #tpu.pipeline_mode<synchronous>, transform_indices = @transform_1, window_bounds = array<i64: 16, 32>}, {pipeline_mode = #tpu.pipeline_mode<synchronous>, transform_indices = @transform_2, window_bounds = array<i64: 1, 32>}, {pipeline_mode = #tpu.pipeline_mode<synchronous>, transform_indices = @transform_3, window_bounds = array<i64: 32, 32>}, {pipeline_mode = #tpu.pipeline_mode<synchronous>, transform_indices = @transform_4, window_bounds = array<i64: 1, 32>}, {pipeline_mode = #tpu.pipeline_mode<synchronous>, transform_indices = @transform_5, window_bounds = array<i64: 32, 32>}, {pipeline_mode = #tpu.pipeline_mode<synchronous>, transform_indices = @transform_6, window_bounds = array<i64: 1, 32>}, {pipeline_mode = #tpu.pipeline_mode<synchronous>, transform_indices = @transform_7, window_bounds = array<i64: 1, 32>}, {transform_indices = @transform_8, window_bounds = array<i64: 1, 1>}, {transform_indices = @transform_9, window_bounds = array<i64: 16, 1>}]} {
    %c0 = arith.constant 0 : index
    %c0_0 = arith.constant 0 : index
    %0 = vector.load %arg1[%c0, %c0_0] : memref<16x16xbf16, #tpu.memory_space<vmem>>, vector<16x16xbf16>
    %c0_1 = arith.constant 0 : index
    %c0_2 = arith.constant 0 : index
    %1 = vector.load %arg2[%c0_1, %c0_2] : memref<16x32xbf16, #tpu.memory_space<vmem>>, vector<16x32xbf16>
    %cst = arith.constant dense<0.000000e+00> : vector<16x32xf32>
    %2 = tpu.matmul %0, %1, %cst {dimension_numbers = #tpu.dot_dimension_numbers<[1], [0], [0], [1], [0, 0, 1, 1], [], []>} : vector<16x16xbf16>, vector<16x32xbf16>, vector<16x32xf32> -> vector<16x32xf32>
    %c0_3 = arith.constant 0 : index
    %c0_4 = arith.constant 0 : index
    %3 = vector.load %arg3[%c0_3, %c0_4] : memref<1x32xf32, #tpu.memory_space<vmem>>, vector<1x32xf32>
    %4 = vector.broadcast %3 : vector<1x32xf32> to vector<16x32xf32>
    %5 = arith.addf %2, %4 : vector<16x32xf32>
    %cst_5 = arith.constant 0.000000e+00 : f32
    %6 = vector.broadcast %cst_5 : f32 to vector<16x32xf32>
    %7 = arith.maximumf %5, %6 : vector<16x32xf32>
    %8 = arith.truncf %7 : vector<16x32xf32> to vector<16x32xbf16>
    %c0_6 = arith.constant 0 : index
    %c0_7 = arith.constant 0 : index
    %9 = vector.load %arg4[%c0_6, %c0_7] : memref<32x32xbf16, #tpu.memory_space<vmem>>, vector<32x32xbf16>
    %cst_8 = arith.constant dense<0.000000e+00> : vector<16x32xf32>
    %10 = tpu.matmul %8, %9, %cst_8 {dimension_numbers = #tpu.dot_dimension_numbers<[1], [0], [0], [1], [0, 0, 1, 1], [], []>} : vector<16x32xbf16>, vector<32x32xbf16>, vector<16x32xf32> -> vector<16x32xf32>
    %c0_9 = arith.constant 0 : index
    %c0_10 = arith.constant 0 : index
    %11 = vector.load %arg5[%c0_9, %c0_10] : memref<1x32xf32, #tpu.memory_space<vmem>>, vector<1x32xf32>
    %12 = vector.broadcast %11 : vector<1x32xf32> to vector<16x32xf32>
    %13 = arith.addf %10, %12 : vector<16x32xf32>
    %cst_11 = arith.constant 0.000000e+00 : f32
    %14 = vector.broadcast %cst_11 : f32 to vector<16x32xf32>
    %15 = arith.maximumf %13, %14 : vector<16x32xf32>
    %16 = arith.truncf %15 : vector<16x32xf32> to vector<16x32xbf16>
    %c0_12 = arith.constant 0 : index
    %c0_13 = arith.constant 0 : index
    %17 = vector.load %arg6[%c0_12, %c0_13] : memref<32x32xbf16, #tpu.memory_space<vmem>>, vector<32x32xbf16>
    %cst_14 = arith.constant dense<0.000000e+00> : vector<16x32xf32>
    %18 = tpu.matmul %16, %17, %cst_14 {dimension_numbers = #tpu.dot_dimension_numbers<[1], [0], [0], [1], [0, 0, 1, 1], [], []>} : vector<16x32xbf16>, vector<32x32xbf16>, vector<16x32xf32> -> vector<16x32xf32>
    %c0_15 = arith.constant 0 : index
    %c0_16 = arith.constant 0 : index
    %19 = vector.load %arg7[%c0_15, %c0_16] : memref<1x32xf32, #tpu.memory_space<vmem>>, vector<1x32xf32>
    %20 = vector.broadcast %19 : vector<1x32xf32> to vector<16x32xf32>
    %21 = arith.addf %18, %20 : vector<16x32xf32>
    %cst_17 = arith.constant 0.000000e+00 : f32
    %22 = vector.broadcast %cst_17 : f32 to vector<16x32xf32>
    %23 = arith.maximumf %21, %22 : vector<16x32xf32>
    %c0_18 = arith.constant 0 : index
    %c0_19 = arith.constant 0 : index
    %24 = vector.load %arg8[%c0_18, %c0_19] : memref<1x32xf32, #tpu.memory_space<vmem>>, vector<1x32xf32>
    %25 = vector.broadcast %24 : vector<1x32xf32> to vector<16x32xf32>
    %26 = arith.mulf %23, %25 : vector<16x32xf32>
    %cst_20 = arith.constant dense<0.000000e+00> : vector<16xf32>
    %27 = vector.multi_reduction <add>, %26, %cst_20 [1] : vector<16x32xf32> to vector<16xf32>
    %28 = vector.shape_cast %27 : vector<16xf32> to vector<16x1xf32>
    %c0_21 = arith.constant 0 : index
    %c0_22 = arith.constant 0 : index
    %29 = memref.load %arg9[%c0_21, %c0_22] : memref<1x1xf32, #tpu.memory_space<smem>>
    %30 = vector.broadcast %29 : f32 to vector<16x1xf32>
    %31 = arith.addf %28, %30 : vector<16x1xf32>
    %c0_23 = arith.constant 0 : index
    %c0_24 = arith.constant 0 : index
    %32 = vector.load %arg10[%c0_23, %c0_24] : memref<16x1xf32, #tpu.memory_space<vmem>>, vector<16x1xf32>
    tpu.vector_store %arg10[%c0_23, %c0_24], %31 {strides = array<i32>} : memref<16x1xf32, #tpu.memory_space<vmem>>, vector<16x1xf32>,
    return
  }
  func.func @transform_0(%arg0: i32) -> (i32, i32) {
    %c0_i32 = arith.constant 0 : i32
    %c0_i32_0 = arith.constant 0 : i32
    return %arg0, %c0_i32 : i32, i32
  }
  func.func @transform_1(%arg0: i32) -> (i32, i32) {
    %c0_i32 = arith.constant 0 : i32
    %c0_i32_0 = arith.constant 0 : i32
    %c0_i32_1 = arith.constant 0 : i32
    return %c0_i32, %c0_i32_0 : i32, i32
  }
  func.func @transform_2(%arg0: i32) -> (i32, i32) {
    %c0_i32 = arith.constant 0 : i32
    %c0_i32_0 = arith.constant 0 : i32
    %c0_i32_1 = arith.constant 0 : i32
    return %c0_i32, %c0_i32_0 : i32, i32
  }
  func.func @transform_3(%arg0: i32) -> (i32, i32) {
    %c0_i32 = arith.constant 0 : i32
    %c0_i32_0 = arith.constant 0 : i32
    %c0_i32_1 = arith.constant 0 : i32
    return %c0_i32, %c0_i32_0 : i32, i32
  }
  func.func @transform_4(%arg0: i32) -> (i32, i32) {
    %c0_i32 = arith.constant 0 : i32
    %c0_i32_0 = arith.constant 0 : i32
    %c0_i32_1 = arith.constant 0 : i32
    return %c0_i32, %c0_i32_0 : i32, i32
  }
  func.func @transform_5(%arg0: i32) -> (i32, i32) {
    %c0_i32 = arith.constant 0 : i32
    %c0_i32_0 = arith.constant 0 : i32
    %c0_i32_1 = arith.constant 0 : i32
    return %c0_i32, %c0_i32_0 : i32, i32
  }
  func.func @transform_6(%arg0: i32) -> (i32, i32) {
    %c0_i32 = arith.constant 0 : i32
    %c0_i32_0 = arith.constant 0 : i32
    %c0_i32_1 = arith.constant 0 : i32
    return %c0_i32, %c0_i32_0 : i32, i32
  }
  func.func @transform_7(%arg0: i32) -> (i32, i32) {
    %c0_i32 = arith.constant 0 : i32
    %c0_i32_0 = arith.constant 0 : i32
    %c0_i32_1 = arith.constant 0 : i32
    return %c0_i32, %c0_i32_0 : i32, i32
  }
  func.func @transform_8(%arg0: i32) -> (i32, i32) {
    %c0_i32 = arith.constant 0 : i32
    %c0_i32_0 = arith.constant 0 : i32
    %c0_i32_1 = arith.constant 0 : i32
    return %c0_i32, %c0_i32_0 : i32, i32
  }
  func.func @transform_9(%arg0: i32) -> (i32, i32) {
    %c0_i32 = arith.constant 0 : i32
    %c0_i32_0 = arith.constant 0 : i32
    return %arg0, %c0_i32 : i32, i32
  }
}

</mosaic_0001>

<bundles_post_ra>
// kernel: tpu_custom_call.1
= control target key start
LH: loop header
LB: loop body
LE: loop exit
PB: predicated region body
PF: predicated region fallthrough
CT: control target
= control target key end

     0   :  { %s994_s0 = inlined_call_operand.vmem [shape: bf16[32,16], index: 0, kind: input, shape index: {}]   ;;  %s995_s1 = inlined_call_operand.hbm [shape: bf16[16,32], index: 1, kind: input, shape index: {}]   ;;  %s996_s2 = inlined_call_operand.vmem [shape: f32[1,32], index: 2, kind: input, shape index: {}]   ;;  %s997_s3 = inlined_call_operand.vmem [shape: bf16[32,32], index: 3, kind: input, shape index: {}]   ;;  %s998_s4 = inlined_call_operand.hbm [shape: f32[1,32], index: 4, kind: input, shape index: {}]   ;;  %s999_s5 = inlined_call_operand.vmem [shape: bf16[32,32], index: 5, kind: input, shape index: {}]   ;;  %s1000_s6 = inlined_call_operand.vmem [shape: f32[1,32], index: 6, kind: input, shape index: {}]   ;;  %s1001_s7 = inlined_call_operand.vmem [shape: f32[1,32], index: 7, kind: input, shape index: {}]   ;;  %s1002_s8 = inlined_call_operand.<no memory space> [shape: f32[1,1], index: 8, kind: input, shape index: {}]   ;;  %s1003_s9 = inlined_call_operand.vmem [shape: f32[32,1], index: 9, kind: output, shape index: {}]  }
   0x1   :  { %14 = sst [smem:[#allocation2]] %s1002_s8 }
   0x2   :  { %15 = vsyncpa [#allocation4], 0 }
   0x3   :  { %16 = vsyncpa [#allocation6], 0  ;;  %s900_s11 = smov 0  }
   0x4 LB: > { %s676_s12 = sadd.s32 4294967295, %s839_s11   ;;  %p678_p0 = scmp.ge.s32.totalorder %s839_s11, 1  ;;  %s839_s11 = sphi %s900_s11, %s22_s11  }
   0x5   : > { %p247_p1 = scmp.lt.s32.totalorder %s839_s11, 3  ;;  %s841_s13 = smov [#allocation3]  }
   0x6   : > { %s259_s14 = sshll.u32 %s841_s13, 4  ;;  %p914_p3 = scmp.eq.s32.totalorder %s676_s12, 0  ;;  %s260_s14 = int_to_ptr.vmem [resolvable:$true] %s259_s14 }
   0x7   : > { %p908_p2 = pnand %p678_p0, %p247_p1  ;;  %s842_s16 = smov [#allocation5]  }
   0x8   : > { %s279_s17 = sshll.u32 %s842_s16, 4  ;;  %s784_s19 = scalar_lea.vmem %s260_s14, 128  ;;  %s280_s17 = int_to_ptr.vmem [resolvable:$true] %s279_s17 }
   0x9   : > { %p742_p4 = pneg %p908_p2  ;;  %p785_p7 = scmp.ne.s32.totalorder %s260_s14, %s784_s19 }
   0xa   : > { %p792_p10 = scmp.lt.s32.totalorder %s260_s14, %s260_s14  ;;  %p793_p11 = scmp.lt.s32.totalorder %s784_s19, %s784_s19 }
   0xb   : > { %p922_p5 = pnand %p914_p3, %p742_p4 }
   0xc   : > { %p794_p12 = por %p793_p11, %p792_p10 }
   0xd   : > { %p775_p6 = pneg %p922_p5 }
   0xf   : > { %p787_p8 = pnand %p785_p7, %p775_p6 }
  0x11   : > { %p788_p9 = pneg %p787_p8 }
  0x13   : > { %p795_p13 = pnand %p794_p12, %p788_p9 }
  0x15   : > { %798 = shalt.err (!%p795_p13)
}
  0x16   : > { %s843_s20 = smov 64   ;;  %s844_s21 = smov 4  }
  0x17   : > { %745 = dma.hbm_to_vmem [thread:$0]  (!%p922_p5), %s995_s1, 128, %s260_s14, [#allocation4], %s843_s20, %s843_s20, %s844_s21  }
  0x18   : > { %s810_s24 = scalar_lea.vmem %s280_s17, 16  ;;  %s817_s25 = scalar_lea.vmem %s280_s17, 32 }
  0x19   : > { %p811_p0 = scmp.ne.s32.totalorder %s280_s17, %s810_s24  ;;  %p818_p7 = scmp.lt.s32.totalorder %s280_s17, %s280_s17 }
  0x1a   : > { %p819_p8 = scmp.lt.s32.totalorder %s817_s25, %s810_s24 }
  0x1b   : > { %p813_p1 = pnand %p811_p0, %p775_p6 }
  0x1c   : > { %p820_p9 = por %p819_p8, %p818_p7 }
  0x1d   : > { %p814_p4 = pneg %p813_p1 }
  0x1f   : > { %p821_p10 = pnand %p820_p9, %p814_p4 }
  0x21   : > { %824 = shalt.err (!%p821_p10)
}
  0x22   : > { %748 = dma.hbm_to_vmem [thread:$0]  (!%p922_p5), %s998_s4, 16, %s280_s17, [#allocation6]  }
  0x23   : > { %313 = sbr.rel (%p908_p2) target bundleno = 801 (0x321), region = 56 }
  0x28   : > { %830 = dma.done.wait (%p914_p3), [#allocation4], 128  }
  0x29   : > { %832 = vsyncadd (%p914_p3), [#allocation4], 4294967168 }
  0x2a   : > { %834 = dma.done.wait (%p914_p3), [#allocation6], 16  }
  0x2b   : > { %836 = vsyncadd (%p914_p3), [#allocation6], 4294967280  ;;  %s685_s28 = sshll.u32 %s676_s12, 1  ;;  %v845_v0 = vmov 0.0   ;;  %vm846_vm0 = vmmov 0   ;;  %v767_v1 = vld [vmem:[#allocation3] sm:$0xff]  }
  0x2c   : > { %712 = vmatprep.subr.bf16.mxu0 %v845_v0  ;;  %714 = vmatprep.mubr.msk.bf16.mxu0 %vm846_vm0, %v845_v0  ;;  %p354_p2 = scmp.lt.s32.totalorder %s685_s28, 3  ;;  %vm388_vm1 = vcmask 130048   ;;  %v769_v3 = vld [vmem:[%s997_s3 + $0x8] sm:$0xff]   ;;  %v770_v4 = vld [vmem:[%s997_s3] sm:$0xff]   ;;  %vm459_vm2 = vcmask 261120   ;;  %s591_s26 = sld [smem:[#allocation2]] }
  0x2d   : > { %718 = vmatprep.subr.bf16.mxu1 %v845_v0  ;;  %722 = vmatprep.mubr.msk.bf16.mxu1 %vm846_vm0, %v845_v0  ;;  %v689_v5 = vld [vmem:[%s996_s2] ss:$0 sm:$0xff]  ;;  %v771_v15 = vld [vmem:[%s999_s5 + $0x8] sm:$0xff]   ;;  %vm595_vm3 = vcmask 7168  }
  0x2e   : > { %s1008_s28 = smov (!%p354_p2, %s685_s28), 3  ;;  %713 = vmatpush3.bf16.msra.mxu0 %v767_v1  ;;  %719 = vmatpush3.bf16.msra.mxu1 %v769_v3  ;;  %v772_v16 = vld [vmem:[%s999_s5] sm:$0xff]   ;;  %v693_v17 = vld [vmem:[#allocation5] ss:$0 sm:$0xff] }
  0x2f   : > { %s686_s29 = sshll.u32 %s1008_s28, 2  ;;  %726 = vmatprep.subr.bf16.mxu0 %v845_v0  ;;  %720 = vmatprep.subr.bf16.mxu1 %v845_v0  ;;  %v697_v27 = vld [vmem:[%s1000_s6] ss:$0 sm:$0xff]  ;;  %s688_s27 = sshll.u32 %s1008_s28, 3 }
  0x30   : > { %s357_s13 = scalar_lea.vmem %s994_s0, %s686_s29  ;;  %v701_v31 = vld [vmem:[%s1001_s7] ss:$0 sm:$0xff]  ;;  %s363_s10 = scalar_lea.vmem %s1003_s9, %s688_s27 }
  0x31   : > { %v768_v2 = vld [vmem:[%s357_s13] sm:$0xff]  }
  0x32   : > { %715 = vmatmul.mubr.msk.bf16.vlgmr.msra.gmra.mxu0 %vm388_vm1, %v768_v2  ;;  %721 = vmatpush3.bf16.msra.mxu1 %v770_v4  ;;  %v592_v41 = vstv %s591_s26 }
  0x33   : > { %730 = vmatprep.mubr.msk.bf16.mxu0 %vm846_vm0, %v845_v0  ;;  %727 = vmatpush3.bf16.msra.mxu0 %v771_v15 }
  0x34   : > { %728 = vmatprep.subr.bf16.mxu0 %v845_v0 }
  0x37   : > { %729 = vmatpush3.bf16.msra.mxu0 %v772_v16 }
  0xf2   : > { %v426_v6 = vpop.f32.mrf.mxu0 }
  0xf3   : > { %v427_v8 = vadd.f32 %v689_v5, %v426_v6 }
  0xf4   : > { %v716_v7 = vpop.f32.mrf.mxu0 }
  0xf5   : > { %v433_v12 = vmax.f32 %v427_v8, 0.0 }
  0xf6   : > { %v429_v9 = vpop.f32.mrf.mxu0 }
  0xf7   : > { %v430_v10 = vadd.f32 %v689_v5, %v429_v9 }
  0xf8   : > { %v717_v11 = vpop.f32.mrf.mxu0 }
  0xf9   : > { %v434_v13 = vmax.f32 %v430_v10, 0.0 }
  0xfb   : > { %v435_v14 = vpack.c.bf16 %v434_v13, %v433_v12 }
  0xfd   : > { %723 = vmatmul.mubr.msk.bf16.vlgmr.msra.gmra.mxu1 %vm459_vm2, %v435_v14 }
 0x1bd   : > { %v497_v18 = vpop.f32.mrf.mxu1 }
 0x1be   : > { %v498_v20 = vadd.f32 %v693_v17, %v497_v18 }
 0x1bf   : > { %v724_v19 = vpop.f32.mrf.mxu1 }
 0x1c0   : > { %v504_v24 = vmax.f32 %v498_v20, 0.0 }
 0x1c1   : > { %v500_v21 = vpop.f32.mrf.mxu1 }
 0x1c2   : > { %v501_v22 = vadd.f32 %v693_v17, %v500_v21 }
 0x1c3   : > { %v725_v23 = vpop.f32.mrf.mxu1 }
 0x1c4   : > { %v505_v25 = vmax.f32 %v501_v22, 0.0 }
 0x1c6   : > { %v506_v26 = vpack.c.bf16 %v505_v25, %v504_v24 }
 0x1c8   : > { %731 = vmatmul.mubr.msk.bf16.vlgmr.msra.gmra.mxu0 %vm459_vm2, %v506_v26 }
 0x288   : > { %v567_v28 = vpop.f32.mrf.mxu0 }
 0x289   : > { %v568_v29 = vadd.f32 %v697_v27, %v567_v28 }
 0x28a   : > { %v732_v30 = vpop.f32.mrf.mxu0 }
 0x28b   : > { %v574_v32 = vmax.f32 %v568_v29, 0.0 }
 0x28c   : > { %v570_v33 = vpop.f32.mrf.mxu0 }
 0x28d   : > { %v571_v34 = vadd.f32 %v697_v27, %v570_v33  ;;  %v583_v35 = vmul.f32 %v701_v31, %v574_v32 }
 0x28e   : > { %v733_v36 = vpop.f32.mrf.mxu0 }
 0x28f   : > { %v575_v37 = vmax.f32 %v571_v34, 0.0  ;;  %v585_v38 = vsel %vm459_vm2, %v583_v35, 0.0 }
 0x290   : > { %586 = vadd.xlane.f32.xlu0 %v585_v38 }
 0x291   : > { %v584_v39 = vmul.f32 %v701_v31, %v575_v37 }
 0x293   : > { %v588_v40 = vsel %vm459_vm2, %v584_v39, 0.0 }
 0x294   : > { %589 = vadd.xlane.f32.xlu0 %v588_v40 }
 0x319   : > { %v587_v42 = vpop.xlane.xlu0 %586 }
 0x31a   : > { %v593_v43 = vadd.f32 %v592_v41, %v587_v42 }
 0x31c   : > { %596 = vst.msk [vmem:[%s363_s10] sm:$0xff] %vm595_vm3, %v593_v43 }
 0x31d   : > { %v590_v44 = vpop.xlane.xlu0 %589 }
 0x31e   : > { %v594_v45 = vadd.f32 %v592_v41, %v590_v44 }
 0x320   : > { %597 = vst.msk [vmem:[%s363_s10 + $0x8] sm:$0xff] %vm595_vm3, %v594_v45 }
 0x321 PF: > { %s22_s11 = sadd.s32 1, %s839_s11  }
 0x322   : > { %p19_p3 = scmp.ge.s32.totalorder %s22_s11, 4  }
 0x324   :  { %21 = sbr.rel (!%p19_p3) target bundleno = 4 (0x4), region = 95 }
 0x329   :  { %620 = vsyncpa [#allocation4], 1 }
 0x32a   :  { %622 = vsyncpa [#allocation4 + $0x1], 1 }
 0x32b   :  { %623 = vsyncpa [#allocation6], 1 }

</bundles_post_ra>
